<compile_context>
chip_gen: v6e
topology: v6e:2x2x1
jax: 0.10.0
libtpu: 0.0.40
codegen_flags: <defaults>
</compile_context>

<pallas_src>
import functools

import jax
import jax.numpy as jnp
from jax.experimental import pallas as pl
from jax.experimental.pallas import tpu as pltpu

_LANE_CANDIDATES = (2048, 1024, 512, 256, 128)   # lane-dense slab widths
_TARGET_BLOCK_ELEMS = 1 << 20                    # ~1M elems ~= 4 MiB f32/block
_SMALL_N_THRESHOLD = 1 << 17                     # below this, plain JAX wins
_VMEM_LIMIT_BYTES = 32 * 1024 * 1024             # needed on v5e (16 MiB default),
                                                 # safe on v7x (<= 48 MiB guidance)


def _bingen_kernel(x_ref, o_ref, *, scale, bias):
    # y = round((x + bias) * scale), computed in f32, stored as rtype.
    x = x_ref[...].astype(jnp.float32)
    o_ref[...] = jnp.round((x + bias) * scale).astype(o_ref.dtype)


def _bingen_jax(source, scale, bias, rtype):
    y = source.astype(jnp.float32)
    return jnp.round((y + bias) * scale).astype(rtype)


def _sublane_multiple(dtype) -> int:
    """Minimum second-to-last block dim for a dtype's packed vreg tiling."""
    itemsize = jnp.dtype(dtype).itemsize
    # 4B -> 8, 2B -> 16, 1B -> 32; clamp to >= 8 for wider types.
    return max(8, 32 // max(1, itemsize))


def bingen(source, width=8, mode="bipolar", rtype=jnp.float32,
           force_pallas=False):
    """Pallas implementation of BinGen.__init__ compute; forward() returns it."""
    mode = mode.lower()
    assert mode in ("unipolar", "bipolar"), (
        "mode must be one of ['unipolar', 'bipolar']")

    if mode == "bipolar":
        # ((x + 1) / 2) * 2**width == (x + 1) * (2**width / 2)  (exact in fp)
        bias = 1.0
        scale = float(2 ** width) / 2.0
    else:
        bias = 0.0
        scale = float(2 ** width)

    orig_shape = source.shape
    n = int(source.size)

    # Fallbacks: tiny inputs (launch overhead dominates) or sizes that are not
    # a multiple of the 128-lane width (would force a pad + slice HBM copy).
    if n == 0 or n % 128 != 0 or (n < _SMALL_N_THRESHOLD and not force_pallas):
        return _bingen_jax(source, scale, bias, rtype)

    # Pick the widest lane-dense slab width that divides n (unmasked stores).
    lane = 128
    for cand in _LANE_CANDIDATES:
        if n % cand == 0:
            lane = cand
            break
    rows = n // lane

    # Sublane multiple must respect the packed tiling of BOTH dtypes
    # (8 for 32-bit, 16 for bf16/f16, 32 for int8/uint8/fp8).
    sub = max(_sublane_multiple(source.dtype), _sublane_multiple(rtype))

    # Block rows: target ~_TARGET_BLOCK_ELEMS elements per block, rounded to
    # the sublane multiple, with >= 2 balanced blocks whenever possible so the
    # DMA pipeline overlaps and v7x's 2 TensorCores both get work.
    if rows >= 2 * sub:
        target_rows = max(sub, (_TARGET_BLOCK_ELEMS // lane) // sub * sub)
        num_blocks = max(2, pl.cdiv(rows, target_rows))
        # Prefer an even block count (v7x 2-TC sharding) when rows allow it.
        if num_blocks % 2 == 1 and rows >= (num_blocks + 1) * sub:
            num_blocks += 1
        # Balanced blocks: ceil(rows / num_blocks) rounded up to sublane mult.
        tile_rows = pl.cdiv(pl.cdiv(rows, num_blocks), sub) * sub
        tile_rows = max(sub, min(tile_rows, (rows // sub) * sub))
        num_blocks = pl.cdiv(rows, tile_rows)
    else:
        # Too few rows to split while honouring the sublane tiling: one block
        # spanning the full first dim (allowed: block dim == full array dim).
        tile_rows = rows
        num_blocks = 1

    # Contiguous reshape only -- no cast, no pad, no slice.
    x2d = source.reshape(rows, lane)

    kernel = functools.partial(_bingen_kernel, scale=scale, bias=bias)

    in_bytes = jnp.dtype(source.dtype).itemsize
    out_bytes = jnp.dtype(rtype).itemsize
    cost = pl.CostEstimate(
        flops=3 * n,                       # add + mul + round per element
        transcendentals=0,
        bytes_accessed=n * (in_bytes + out_bytes),
    )

    out2d = pl.pallas_call(
        kernel,
        out_shape=jax.ShapeDtypeStruct((rows, lane), rtype),
        grid=(num_blocks,),
        in_specs=[pl.BlockSpec((tile_rows, lane), lambda i: (i, 0))],
        out_specs=pl.BlockSpec((tile_rows, lane), lambda i: (i, 0)),
        compiler_params=pltpu.CompilerParams(
            dimension_semantics=("parallel",),
            vmem_limit_bytes=_VMEM_LIMIT_BYTES,
        ),
        cost_estimate=cost,
    )(x2d)

    return out2d.reshape(orig_shape)


def bingen_reference(source, width=8, mode="bipolar", rtype=jnp.float32):
    """Plain-JAX reference mirroring the PyTorch module exactly."""
    mode = mode.lower()
    y = source.astype(jnp.float32)
    if mode == "bipolar":
        y = (y + 1.0) / 2.0
    y = y * (2.0 ** width)
    return jnp.round(y).astype(rtype)


if __name__ == "__main__":
    key = jax.random.PRNGKey(0)
    k_small, k_big = jax.random.split(key)

    # Small NCHW demo shape matching the PyTorch module usage; force the
    # Pallas path so the kernel itself is exercised on TPU.
    x_small = jax.random.uniform(k_small, (2, 4, 16, 16), dtype=jnp.float32,
                                 minval=-1.0, maxval=1.0)
    out_small = bingen(x_small, width=8, mode="bipolar", rtype=jnp.float32,
                       force_pallas=True)
    out_small = jax.block_until_ready(out_small)
    ref_small = bingen_reference(x_small, width=8, mode="bipolar")
    assert out_small.shape == x_small.shape and out_small.dtype == jnp.float32
    assert bool(jnp.all(jnp.abs(out_small - ref_small) <= 1e-5)), \
        "bipolar mismatch vs reference"

    # Modest larger input exercising the multi-block tiled / pipelined path
    # (>= 2 balanced blocks -> DMA overlap + v7x 2-TC sharding).
    x_big = jax.random.uniform(k_big, (4, 16, 128, 128), dtype=jnp.float32,
                               minval=0.0, maxval=1.0)
    out_big = jax.block_until_ready(
        bingen(x_big, width=8, mode="unipolar", rtype=jnp.float32))
    ref_big = bingen_reference(x_big, width=8, mode="unipolar")
    assert out_big.shape == x_big.shape and out_big.dtype == jnp.float32
    assert bool(jnp.all(jnp.abs(out_big - ref_big) <= 1e-5)), \
        "unipolar mismatch vs reference"

    # Sub-32-bit output dtype path (tile_rows rounded to the 16-sublane bf16
    # packing so output stores remain unmasked / lane-dense).
    out_bf16 = jax.block_until_ready(
        bingen(x_big, width=8, mode="bipolar", rtype=jnp.bfloat16))
    ref_bf16 = bingen_reference(x_big, width=8, mode="bipolar",
                                rtype=jnp.bfloat16)
    assert out_bf16.shape == x_big.shape and out_bf16.dtype == jnp.bfloat16
    assert bool(jnp.all(jnp.abs(out_bf16.astype(jnp.float32)
                                - ref_bf16.astype(jnp.float32)) <= 1.0)), \
        "bf16 mismatch vs reference"

    print("KERNEL_OK")
</pallas_src>

<mosaic_0001>
module attributes {stable_mosaic.version = 11 : i64} {
  func.func @_bingen_kernel(%arg0: i32, %arg1: memref<1x2048xf32, #tpu.memory_space<vmem>>, %arg2: memref<1x2048xf32, #tpu.memory_space<vmem>>) attributes {dimension_semantics = [#tpu.dimension_semantics<parallel>], iteration_bounds = array<i64: 1>, scalar_prefetch = 0 : i64, scratch_operands = 0 : i64, tpu.core_type = #tpu.core_type<tc>, window_params = [{transform_indices = @transform_0, window_bounds = array<i64: 1, 2048>}, {transform_indices = @transform_1, window_bounds = array<i64: 1, 2048>}]} {
    %c0 = arith.constant 0 : index
    %c0_0 = arith.constant 0 : index
    %0 = vector.load %arg1[%c0, %c0_0] : memref<1x2048xf32, #tpu.memory_space<vmem>>, vector<1x2048xf32>
    %cst = arith.constant 1.000000e+00 : f32
    %1 = vector.broadcast %cst : f32 to vector<1x2048xf32>
    %2 = arith.addf %0, %1 : vector<1x2048xf32>
    %cst_1 = arith.constant 1.280000e+02 : f32
    %3 = vector.broadcast %cst_1 : f32 to vector<1x2048xf32>
    %4 = arith.mulf %2, %3 : vector<1x2048xf32>
    %5 = math.roundeven %4 : vector<1x2048xf32>
    %c0_2 = arith.constant 0 : index
    %c0_3 = arith.constant 0 : index
    %6 = vector.load %arg2[%c0_2, %c0_3] : memref<1x2048xf32, #tpu.memory_space<vmem>>, vector<1x2048xf32>
    tpu.vector_store %arg2[%c0_2, %c0_3], %5 {strides = array<i32>} : memref<1x2048xf32, #tpu.memory_space<vmem>>, vector<1x2048xf32>,
    return
  }
  func.func @transform_0(%arg0: i32) -> (i32, i32) {
    %c0_i32 = arith.constant 0 : i32
    %c0_i32_0 = arith.constant 0 : i32
    return %arg0, %c0_i32 : i32, i32
  }
  func.func @transform_1(%arg0: i32) -> (i32, i32) {
    %c0_i32 = arith.constant 0 : i32
    %c0_i32_0 = arith.constant 0 : i32
    return %arg0, %c0_i32 : i32, i32
  }
}

</mosaic_0001>

<bundles_post_ra>
// kernel: tpu_custom_call.1
= control target key start
LH: loop header
LB: loop body
LE: loop exit
PB: predicated region body
PF: predicated region fallthrough
CT: control target
= control target key end

     0   :  { %6 = vsyncpa [#allocation3], 0  ;;  %s126_s0 = inlined_call_operand.hbm [shape: f32[1,2048], index: 0, kind: input, shape index: {}]   ;;  %s127_s1 = inlined_call_operand.hbm [shape: f32[1,2048], index: 1, kind: output, shape index: {}]  }
   0x1   :  { %7 = vsyncpa [#allocation4], 0  ;;  %s108_s6 = smov [#allocation2]  }
   0x2   :  { %s14_s7 = sshll.u32 %s108_s6, 4  ;;  %s15_s7 = int_to_ptr.vmem [resolvable:$true] %s14_s7 }
   0x3   :  { %s72_s8 = scalar_lea.vmem %s15_s7, 256  ;;  %p77_p1 = scmp.lt.s32.totalorder %s15_s7, %s15_s7 }
   0x4   :  { %p73_p0 = scmp.ne.s32.totalorder %s15_s7, %s72_s8  ;;  %p78_p2 = scmp.lt.s32.totalorder %s72_s8, %s72_s8 }
   0x6   :  { %p79_p3 = por %p78_p2, %p77_p1 }
   0x8   :  { %p80_p4 = pnand %p79_p3, %p73_p0 }
   0xa   :  { %83 = shalt.err (!%p80_p4)
}
   0xb   :  { %17 = dma.hbm_to_vmem [thread:$0]  %s126_s0, 256, %s15_s7, [#allocation3]  }
   0xc   :  { %104 = dma.done.wait [#allocation3], 256  }
   0xd   :  { %105 = vsyncadd [#allocation3], 4294967040  ;;  %v21_v0 = vld [vmem:[#allocation2] sm:$0xff]  ;;  %v22_v1 = vld [vmem:[#allocation2 + $0x8] sm:$0xff]  ;;  %s109_s0 = smov [#allocation5]  }
   0xe   :  { %v23_v2 = vadd.f32 1.0, %v21_v0  ;;  %v24_v3 = vadd.f32 1.0, %v22_v1  ;;  %s37_s11 = sshll.u32 %s109_s0, 4  ;;  %s38_s11 = int_to_ptr.vmem [resolvable:$true] %s37_s11 }
   0xf   :  { %s84_s12 = scalar_lea.vmem %s38_s11, 256  ;;  %p89_p6 = scmp.lt.s32.totalorder %s38_s11, %s38_s11 }
  0x10   :  { %v25_v4 = vmul.f32 128.0, %v23_v2  ;;  %v26_v5 = vmul.f32 128.0, %v24_v3  ;;  %p85_p5 = scmp.ne.s32.totalorder %s38_s11, %s84_s12  ;;  %p90_p7 = scmp.lt.s32.totalorder %s84_s12, %s84_s12 }
  0x12   :  { %v48_v6 = vcvt.f32.s32 %v25_v4  ;;  %v46_v7 = vand.u32 2147483647, %v25_v4  ;;  %v56_v8 = vcvt.f32.s32 %v26_v5  ;;  %v51_v10 = vand.u32 2147483648, %v25_v4  ;;  %p91_p8 = por %p90_p7, %p89_p6 }
  0x13   :  { %v54_v11 = vand.u32 2147483647, %v26_v5  ;;  %v59_v13 = vand.u32 2147483648, %v26_v5 }
  0x14   :  { %v49_v9 = vcvt.s32.f32 %v48_v6  ;;  %v57_v12 = vcvt.s32.f32 %v56_v8  ;;  %vm47_vm0 = vcmp.lt.f32.partialorder %v46_v7, 8388608.0  ;;  %p92_p9 = pnand %p91_p8, %p85_p5 }
  0x15   :  { %vm55_vm1 = vcmp.lt.f32.partialorder %v54_v11, 8388608.0 }
  0x16   :  { %v50_v14 = vand.u32 2147483647, %v49_v9  ;;  %v58_v15 = vand.u32 2147483647, %v57_v12 }
  0x18   :  { %v52_v16 = vor.u32 %v51_v10, %v50_v14  ;;  %v60_v17 = vor.u32 %v59_v13, %v58_v15 }
  0x1a   :  { %v53_v18 = vsel %vm47_vm0, %v52_v16, %v25_v4  ;;  %v61_v19 = vsel %vm55_vm1, %v60_v17, %v26_v5 }
  0x1b   :  { %29 = vst [vmem:[#allocation5] sm:$0xff] %v53_v18  ;;  %30 = vst [vmem:[#allocation5 + $0x8] sm:$0xff] %v61_v19 }
  0x1c   :  { %95 = shalt.err (!%p92_p9)
}
  0x1d   :  { %40 = dma.vmem_to_hbm [thread:$0]  %s38_s11, 256, %s127_s1, [#allocation4]  }
  0x1e   :  { %106 = dma.done.wait [#allocation4], 256  }
  0x1f   :  { %107 = vsyncadd [#allocation4], 4294967040 }
  0x20   :  { %44 = vsyncpa [#allocation3], 1 }
  0x21   :  { %45 = vsyncpa [#allocation4], 1 }

</bundles_post_ra>
